<compile_context>
chip_gen: v5e
topology: v5e:2x2
jax: 0.10.0
libtpu: 0.0.40
codegen_flags: <defaults>
</compile_context>

<pallas_src>
import functools

import jax
import jax.numpy as jnp
from jax.experimental import pallas as pl
from jax.experimental.pallas import tpu as pltpu

SELU_ALPHA = 1.6732632423543772848170429916717
SELU_SCALE = 1.0507009873554804934193349852946


def _elu(x):
    # alpha = 1.0 (PyTorch default). Clamp exp arg to avoid overflow on + side.
    return jnp.where(x > 0, x, jnp.exp(jnp.minimum(x, 0.0)) - 1.0)


def _selu(x):
    return SELU_SCALE * jnp.where(
        x > 0, x, SELU_ALPHA * (jnp.exp(jnp.minimum(x, 0.0)) - 1.0)
    )


_ACTS = (
    jax.nn.sigmoid,                     # il   + Sigmoid
    lambda v: jnp.maximum(v, 0.0),      # hl1  + ReLU
    _elu,                               # hl2  + ELU
    _selu,                              # hl3  + SELU
    jnp.tanh,                           # hl4  + Tanh
    lambda v: v,                        # ol   (no activation)
)


def mlp_kernel(x_ref,
               w0_ref, w1_ref, w2_ref, w3_ref, w4_ref, w5_ref,
               b_ref, o_ref):
    w_refs = (w0_ref, w1_ref, w2_ref, w3_ref, w4_ref, w5_ref)
    h = x_ref[...]                      # (TILE_B, in) bf16 (cast upstream)
    for i, (w_ref, act) in enumerate(zip(w_refs, _ACTS)):
        n_out = w_ref.shape[1]
        b = b_ref[i:i + 1, 0:n_out]     # (1, n_out) f32, broadcasts over batch
        # bf16 operands on the MXU, f32 accumulate; bias add + activation in f32.
        lhs = h if h.dtype == jnp.bfloat16 else h.astype(jnp.bfloat16)
        z = jnp.dot(lhs, w_ref[...], preferred_element_type=jnp.float32) + b
        h = act(z)
    o_ref[...] = h


def _round_up(n, m):
    return ((n + m - 1) // m) * m


def init_params(key, input_size, output_size):
    """Weights in bf16 (MXU / HBM-traffic friendly), biases in f32."""
    dims = [input_size, 512, 256, 64, 16, 16, output_size]
    weights, biases = [], []
    for i in range(len(dims) - 1):
        fan_in, fan_out = dims[i], dims[i + 1]
        key, kw, kb = jax.random.split(key, 3)
        bound = 1.0 / (fan_in ** 0.5)   # matches nn.Linear default init range
        w = jax.random.uniform(kw, (fan_in, fan_out), jnp.float32, -bound, bound)
        b = jax.random.uniform(kb, (fan_out,), jnp.float32, -bound, bound)
        weights.append(w.astype(jnp.bfloat16))
        biases.append(b)
    return weights, biases


def pack_params(weights, biases):
    """Pack biases into one lane-aligned f32 slab (done once, outside jit)."""
    width = _round_up(max(b.shape[0] for b in biases), 128)
    rows = _round_up(len(biases), 8)    # sublane-aligned row count
    slab = jnp.zeros((rows, width), jnp.float32)
    for i, b in enumerate(biases):
        slab = slab.at[i, : b.shape[0]].set(b)
    return tuple(weights), slab


@functools.partial(jax.jit, static_argnames=("tile_b",))
def neuralnet4graph_emb_forward(x, weights, bias_slab, *, tile_b=1024):
    B, in_dim = x.shape
    out_dim = weights[-1].shape[-1]

    # Layer 1 truncates to bf16 anyway; casting upstream halves input DMA bytes.
    x = x.astype(jnp.bfloat16)

    # Batch tile: multiple of 8 (sublane), capped at tile_b (sweep
    # 512/1024/2048/4096 per generation), never bigger than the padded batch.
    tb = min(tile_b, _round_up(B, 8))
    b_pad = _round_up(B, tb)
    if b_pad != B:
        x = jnp.pad(x, ((0, b_pad - B), (0, 0)))

    x_spec = pl.BlockSpec((tb, in_dim), lambda i: (i, 0))
    w_specs = [pl.BlockSpec(w.shape, lambda i: (0, 0)) for w in weights]
    b_spec = pl.BlockSpec(bias_slab.shape, lambda i: (0, 0))
    out_spec = pl.BlockSpec((tb, out_dim), lambda i: (i, 0))

    out = pl.pallas_call(
        mlp_kernel,
        out_shape=jax.ShapeDtypeStruct((b_pad, out_dim), jnp.float32),
        grid=(b_pad // tb,),
        in_specs=[x_spec, *w_specs, b_spec],
        out_specs=out_spec,
        compiler_params=pltpu.CompilerParams(
            dimension_semantics=("parallel",),
            # 32 MiB == v6e/v7x scoped default (no-op there); lifts v5e's
            # 16 MiB default so large batch tiles don't trip the limit.
            vmem_limit_bytes=32 * 1024 * 1024,
        ),
    )(x, *weights, bias_slab)
    return out[:B]


def reference_forward(x, weights, biases):
    """Pure-JAX reference using the exact same dtype recipe as the kernel."""
    h = x.astype(jnp.bfloat16)
    for w, b, act in zip(weights, biases, _ACTS):
        lhs = h if h.dtype == jnp.bfloat16 else h.astype(jnp.bfloat16)
        z = jnp.dot(lhs, w, preferred_element_type=jnp.float32) + b
        h = act(z)
    return h


if __name__ == "__main__":
    key = jax.random.PRNGKey(0)
    input_size = 32
    output_size = 4
    batch = 8

    kx, kp = jax.random.split(key)
    x = jax.random.normal(kx, (batch, input_size), jnp.float32)
    weights, biases = init_params(kp, input_size, output_size)
    weights_t, bias_slab = pack_params(weights, biases)

    out = neuralnet4graph_emb_forward(x, weights_t, bias_slab)
    out = jax.block_until_ready(out)

    ref = reference_forward(x, weights, biases)
    assert out.shape == (batch, output_size)
    assert jnp.allclose(out, ref, atol=1e-2, rtol=1e-2), "mismatch vs JAX reference"

    print("KERNEL_OK")
</pallas_src>

<mosaic_0001>
module attributes {stable_mosaic.version = 11 : i64} {
  func.func @mlp_kernel(%arg0: i32, %arg1: memref<8x32xbf16, #tpu.memory_space<vmem>>, %arg2: memref<32x512xbf16, #tpu.memory_space<vmem>>, %arg3: memref<512x256xbf16, #tpu.memory_space<vmem>>, %arg4: memref<256x64xbf16, #tpu.memory_space<vmem>>, %arg5: memref<64x16xbf16, #tpu.memory_space<vmem>>, %arg6: memref<16x16xbf16, #tpu.memory_space<vmem>>, %arg7: memref<16x4xbf16, #tpu.memory_space<vmem>>, %arg8: memref<8x512xf32, #tpu.memory_space<vmem>>, %arg9: memref<8x4xf32, #tpu.memory_space<vmem>>) attributes {dimension_semantics = [#tpu.dimension_semantics<parallel>], iteration_bounds = array<i64: 1>, scalar_prefetch = 0 : i64, scratch_operands = 0 : i64, tpu.core_type = #tpu.core_type<tc>, window_params = [{transform_indices = @transform_0, window_bounds = array<i64: 8, 32>}, {pipeline_mode = #tpu.pipeline_mode<synchronous>, transform_indices = @transform_1, window_bounds = array<i64: 32, 512>}, {pipeline_mode = #tpu.pipeline_mode<synchronous>, transform_indices = @transform_2, window_bounds = array<i64: 512, 256>}, {pipeline_mode = #tpu.pipeline_mode<synchronous>, transform_indices = @transform_3, window_bounds = array<i64: 256, 64>}, {pipeline_mode = #tpu.pipeline_mode<synchronous>, transform_indices = @transform_4, window_bounds = array<i64: 64, 16>}, {pipeline_mode = #tpu.pipeline_mode<synchronous>, transform_indices = @transform_5, window_bounds = array<i64: 16, 16>}, {pipeline_mode = #tpu.pipeline_mode<synchronous>, transform_indices = @transform_6, window_bounds = array<i64: 16, 4>}, {pipeline_mode = #tpu.pipeline_mode<synchronous>, transform_indices = @transform_7, window_bounds = array<i64: 8, 512>}, {transform_indices = @transform_8, window_bounds = array<i64: 8, 4>}]} {
    %c0 = arith.constant 0 : index
    %c0_0 = arith.constant 0 : index
    %0 = vector.load %arg1[%c0, %c0_0] : memref<8x32xbf16, #tpu.memory_space<vmem>>, vector<8x32xbf16>
    %c0_1 = arith.constant 0 : index
    %c0_2 = arith.constant 0 : index
    %1 = vector.load %arg8[%c0_1, %c0_2] : memref<8x512xf32, #tpu.memory_space<vmem>>, vector<1x512xf32>
    %c0_3 = arith.constant 0 : index
    %c0_4 = arith.constant 0 : index
    %2 = vector.load %arg2[%c0_3, %c0_4] : memref<32x512xbf16, #tpu.memory_space<vmem>>, vector<32x512xbf16>
    %cst = arith.constant dense<0.000000e+00> : vector<8x512xf32>
    %3 = tpu.matmul %0, %2, %cst {dimension_numbers = #tpu.dot_dimension_numbers<[1], [0], [0], [1], [0, 0, 1, 1], [], []>} : vector<8x32xbf16>, vector<32x512xbf16>, vector<8x512xf32> -> vector<8x512xf32>
    %4 = vector.broadcast %1 : vector<1x512xf32> to vector<8x512xf32>
    %5 = arith.addf %3, %4 : vector<8x512xf32>
    %6 = arith.negf %5 : vector<8x512xf32>
    %7 = math.exp %6 : vector<8x512xf32>
    %cst_5 = arith.constant 1.000000e+00 : f32
    %8 = vector.broadcast %cst_5 : f32 to vector<8x512xf32>
    %9 = arith.addf %8, %7 : vector<8x512xf32>
    %10 = arith.divf %8, %9 : vector<8x512xf32>
    %c1 = arith.constant 1 : index
    %c0_6 = arith.constant 0 : index
    %11 = vector.load %arg8[%c1, %c0_6] : memref<8x512xf32, #tpu.memory_space<vmem>>, vector<1x256xf32>
    %12 = arith.truncf %10 : vector<8x512xf32> to vector<8x512xbf16>
    %c0_7 = arith.constant 0 : index
    %c0_8 = arith.constant 0 : index
    %13 = vector.load %arg3[%c0_7, %c0_8] : memref<512x256xbf16, #tpu.memory_space<vmem>>, vector<512x256xbf16>
    %cst_9 = arith.constant dense<0.000000e+00> : vector<8x256xf32>
    %14 = tpu.matmul %12, %13, %cst_9 {dimension_numbers = #tpu.dot_dimension_numbers<[1], [0], [0], [1], [0, 0, 1, 1], [], []>} : vector<8x512xbf16>, vector<512x256xbf16>, vector<8x256xf32> -> vector<8x256xf32>
    %15 = vector.broadcast %11 : vector<1x256xf32> to vector<8x256xf32>
    %16 = arith.addf %14, %15 : vector<8x256xf32>
    %cst_10 = arith.constant 0.000000e+00 : f32
    %17 = vector.broadcast %cst_10 : f32 to vector<8x256xf32>
    %18 = arith.maximumf %16, %17 : vector<8x256xf32>
    %c2 = arith.constant 2 : index
    %c0_11 = arith.constant 0 : index
    %19 = vector.load %arg8[%c2, %c0_11] : memref<8x512xf32, #tpu.memory_space<vmem>>, vector<1x64xf32>
    %20 = arith.truncf %18 : vector<8x256xf32> to vector<8x256xbf16>
    %c0_12 = arith.constant 0 : index
    %c0_13 = arith.constant 0 : index
    %21 = vector.load %arg4[%c0_12, %c0_13] : memref<256x64xbf16, #tpu.memory_space<vmem>>, vector<256x64xbf16>
    %cst_14 = arith.constant dense<0.000000e+00> : vector<8x64xf32>
    %22 = tpu.matmul %20, %21, %cst_14 {dimension_numbers = #tpu.dot_dimension_numbers<[1], [0], [0], [1], [0, 0, 1, 1], [], []>} : vector<8x256xbf16>, vector<256x64xbf16>, vector<8x64xf32> -> vector<8x64xf32>
    %23 = vector.broadcast %19 : vector<1x64xf32> to vector<8x64xf32>
    %24 = arith.addf %22, %23 : vector<8x64xf32>
    %cst_15 = arith.constant 0.000000e+00 : f32
    %25 = vector.broadcast %cst_15 : f32 to vector<8x64xf32>
    %26 = arith.cmpf ogt, %24, %25 : vector<8x64xf32>
    %cst_16 = arith.constant 0.000000e+00 : f32
    %27 = vector.broadcast %cst_16 : f32 to vector<8x64xf32>
    %28 = arith.minimumf %24, %27 : vector<8x64xf32>
    %29 = math.exp %28 : vector<8x64xf32>
    %cst_17 = arith.constant 1.000000e+00 : f32
    %30 = vector.broadcast %cst_17 : f32 to vector<8x64xf32>
    %31 = arith.subf %29, %30 : vector<8x64xf32>
    %32 = arith.select %26, %24, %31 : vector<8x64xi1>, vector<8x64xf32>
    %c3 = arith.constant 3 : index
    %c0_18 = arith.constant 0 : index
    %33 = vector.load %arg8[%c3, %c0_18] : memref<8x512xf32, #tpu.memory_space<vmem>>, vector<1x16xf32>
    %34 = arith.truncf %32 : vector<8x64xf32> to vector<8x64xbf16>
    %c0_19 = arith.constant 0 : index
    %c0_20 = arith.constant 0 : index
    %35 = vector.load %arg5[%c0_19, %c0_20] : memref<64x16xbf16, #tpu.memory_space<vmem>>, vector<64x16xbf16>
    %cst_21 = arith.constant dense<0.000000e+00> : vector<8x16xf32>
    %36 = tpu.matmul %34, %35, %cst_21 {dimension_numbers = #tpu.dot_dimension_numbers<[1], [0], [0], [1], [0, 0, 1, 1], [], []>} : vector<8x64xbf16>, vector<64x16xbf16>, vector<8x16xf32> -> vector<8x16xf32>
    %37 = vector.broadcast %33 : vector<1x16xf32> to vector<8x16xf32>
    %38 = arith.addf %36, %37 : vector<8x16xf32>
    %cst_22 = arith.constant 0.000000e+00 : f32
    %39 = vector.broadcast %cst_22 : f32 to vector<8x16xf32>
    %40 = arith.cmpf ogt, %38, %39 : vector<8x16xf32>
    %cst_23 = arith.constant 0.000000e+00 : f32
    %41 = vector.broadcast %cst_23 : f32 to vector<8x16xf32>
    %42 = arith.minimumf %38, %41 : vector<8x16xf32>
    %43 = math.exp %42 : vector<8x16xf32>
    %cst_24 = arith.constant 1.000000e+00 : f32
    %44 = vector.broadcast %cst_24 : f32 to vector<8x16xf32>
    %45 = arith.subf %43, %44 : vector<8x16xf32>
    %cst_25 = arith.constant 1.67326319 : f32
    %46 = vector.broadcast %cst_25 : f32 to vector<8x16xf32>
    %47 = arith.mulf %46, %45 : vector<8x16xf32>
    %48 = arith.select %40, %38, %47 : vector<8x16xi1>, vector<8x16xf32>
    %cst_26 = arith.constant 1.05070102 : f32
    %49 = vector.broadcast %cst_26 : f32 to vector<8x16xf32>
    %50 = arith.mulf %49, %48 : vector<8x16xf32>
    %c4 = arith.constant 4 : index
    %c0_27 = arith.constant 0 : index
    %51 = vector.load %arg8[%c4, %c0_27] : memref<8x512xf32, #tpu.memory_space<vmem>>, vector<1x16xf32>
    %52 = arith.truncf %50 : vector<8x16xf32> to vector<8x16xbf16>
    %c0_28 = arith.constant 0 : index
    %c0_29 = arith.constant 0 : index
    %53 = vector.load %arg6[%c0_28, %c0_29] : memref<16x16xbf16, #tpu.memory_space<vmem>>, vector<16x16xbf16>
    %cst_30 = arith.constant dense<0.000000e+00> : vector<8x16xf32>
    %54 = tpu.matmul %52, %53, %cst_30 {dimension_numbers = #tpu.dot_dimension_numbers<[1], [0], [0], [1], [0, 0, 1, 1], [], []>} : vector<8x16xbf16>, vector<16x16xbf16>, vector<8x16xf32> -> vector<8x16xf32>
    %55 = vector.broadcast %51 : vector<1x16xf32> to vector<8x16xf32>
    %56 = arith.addf %54, %55 : vector<8x16xf32>
    %57 = math.tanh %56 : vector<8x16xf32>
    %c5 = arith.constant 5 : index
    %c0_31 = arith.constant 0 : index
    %58 = vector.load %arg8[%c5, %c0_31] : memref<8x512xf32, #tpu.memory_space<vmem>>, vector<1x4xf32>
    %59 = arith.truncf %57 : vector<8x16xf32> to vector<8x16xbf16>
    %c0_32 = arith.constant 0 : index
    %c0_33 = arith.constant 0 : index
    %60 = vector.load %arg7[%c0_32, %c0_33] : memref<16x4xbf16, #tpu.memory_space<vmem>>, vector<16x4xbf16>
    %cst_34 = arith.constant dense<0.000000e+00> : vector<8x4xf32>
    %61 = tpu.matmul %59, %60, %cst_34 {dimension_numbers = #tpu.dot_dimension_numbers<[1], [0], [0], [1], [0, 0, 1, 1], [], []>} : vector<8x16xbf16>, vector<16x4xbf16>, vector<8x4xf32> -> vector<8x4xf32>
    %62 = vector.broadcast %58 : vector<1x4xf32> to vector<8x4xf32>
    %63 = arith.addf %61, %62 : vector<8x4xf32>
    %c0_35 = arith.constant 0 : index
    %c0_36 = arith.constant 0 : index
    %64 = vector.load %arg9[%c0_35, %c0_36] : memref<8x4xf32, #tpu.memory_space<vmem>>, vector<8x4xf32>
    tpu.vector_store %arg9[%c0_35, %c0_36], %63 {strides = array<i32>} : memref<8x4xf32, #tpu.memory_space<vmem>>, vector<8x4xf32>,
    return
  }
  func.func @transform_0(%arg0: i32) -> (i32, i32) {
    %c0_i32 = arith.constant 0 : i32
    %c0_i32_0 = arith.constant 0 : i32
    return %arg0, %c0_i32 : i32, i32
  }
  func.func @transform_1(%arg0: i32) -> (i32, i32) {
    %c0_i32 = arith.constant 0 : i32
    %c0_i32_0 = arith.constant 0 : i32
    %c0_i32_1 = arith.constant 0 : i32
    return %c0_i32, %c0_i32_0 : i32, i32
  }
  func.func @transform_2(%arg0: i32) -> (i32, i32) {
    %c0_i32 = arith.constant 0 : i32
    %c0_i32_0 = arith.constant 0 : i32
    %c0_i32_1 = arith.constant 0 : i32
    return %c0_i32, %c0_i32_0 : i32, i32
  }
  func.func @transform_3(%arg0: i32) -> (i32, i32) {
    %c0_i32 = arith.constant 0 : i32
    %c0_i32_0 = arith.constant 0 : i32
    %c0_i32_1 = arith.constant 0 : i32
    return %c0_i32, %c0_i32_0 : i32, i32
  }
  func.func @transform_4(%arg0: i32) -> (i32, i32) {
    %c0_i32 = arith.constant 0 : i32
    %c0_i32_0 = arith.constant 0 : i32
    %c0_i32_1 = arith.constant 0 : i32
    return %c0_i32, %c0_i32_0 : i32, i32
  }
  func.func @transform_5(%arg0: i32) -> (i32, i32) {
    %c0_i32 = arith.constant 0 : i32
    %c0_i32_0 = arith.constant 0 : i32
    %c0_i32_1 = arith.constant 0 : i32
    return %c0_i32, %c0_i32_0 : i32, i32
  }
  func.func @transform_6(%arg0: i32) -> (i32, i32) {
    %c0_i32 = arith.constant 0 : i32
    %c0_i32_0 = arith.constant 0 : i32
    %c0_i32_1 = arith.constant 0 : i32
    return %c0_i32, %c0_i32_0 : i32, i32
  }
  func.func @transform_7(%arg0: i32) -> (i32, i32) {
    %c0_i32 = arith.constant 0 : i32
    %c0_i32_0 = arith.constant 0 : i32
    %c0_i32_1 = arith.constant 0 : i32
    return %c0_i32, %c0_i32_0 : i32, i32
  }
  func.func @transform_8(%arg0: i32) -> (i32, i32) {
    %c0_i32 = arith.constant 0 : i32
    %c0_i32_0 = arith.constant 0 : i32
    return %arg0, %c0_i32 : i32, i32
  }
}

</mosaic_0001>

<bundles_post_ra>
// kernel: neuralnet4graph_emb_forward.1
= control target key start
LH: loop header
LB: loop body
LE: loop exit
PB: predicated region body
PF: predicated region fallthrough
CT: control target
= control target key end

     0   :  { %13 = vsyncpa [#allocation3], 0  ;;  %s1556_s30 = smov [#allocation2]   ;;  %s1557_s10 = smov 128   ;;  %s1787_s0 = inlined_call_operand.vmem [shape: bf16[8,32], index: 0, kind: input, shape index: {}]   ;;  %s1788_s1 = inlined_call_operand.vmem [shape: bf16[32,512], index: 1, kind: input, shape index: {}]   ;;  %s1789_s2 = inlined_call_operand.hbm [shape: bf16[512,256], index: 2, kind: input, shape index: {}]   ;;  %s1790_s3 = inlined_call_operand.vmem [shape: bf16[256,64], index: 3, kind: input, shape index: {}]   ;;  %s1791_s4 = inlined_call_operand.vmem [shape: bf16[64,16], index: 4, kind: input, shape index: {}]   ;;  %s1792_s5 = inlined_call_operand.vmem [shape: bf16[16,16], index: 5, kind: input, shape index: {}]   ;;  %s1793_s6 = inlined_call_operand.vmem [shape: bf16[16,4], index: 6, kind: input, shape index: {}]   ;;  %s1794_s7 = inlined_call_operand.vmem [shape: f32[8,512], index: 7, kind: input, shape index: {}]   ;;  %s1795_s8 = inlined_call_operand.vmem [shape: f32[8,4], index: 8, kind: output, shape index: {}]  }
   0x1   :  { %s22_s29 = sshll.u32 %s1789_s2, 4  ;;  %s24_s9 = sshll.u32 %s1556_s30, 4  ;;  %s23_s29 = int_to_ptr.hbm [resolvable:$true] %s22_s29  ;;  %s25_s9 = int_to_ptr.vmem [resolvable:$true] %s24_s9 }
   0x2   :  { %s1558_s11 = smov 8  }
   0x3   :  { %30 = dma.hbm_to_vmem [thread:$0]  %s23_s29, 8192, %s25_s9, [#allocation3], %s1557_s10, %s1557_s10, %s1558_s11  }
   0x4   :  { %1554 = dma.done.wait [#allocation3], 8192  }
   0x5   :  { %1555 = vsyncadd [#allocation3], 4294959104  ;;  %vm105_vm0 = vcmask 261120   ;;  %v1039_v0 = vld [vmem:[%s1788_s1 + $0x20] sm:$0xf] }
   0x6   :  { %v1417_v1 = vld [vmem:[%s1788_s1 + $0x2c] sm:$0xf0]  ;;  %v1415_v2 = vld [vmem:[%s1788_s1 + $0x24] sm:$0xf]  ;;  %v1041_v4 = vld [vmem:[%s1788_s1 + $0x30] sm:$0xf0] }
   0x7   :  { %v1040_v3 = vor.u32 %v1417_v1, %v1039_v0  ;;  %v1047_v5 = vld [vmem:[%s1788_s1 + $0x28] sm:$0xf]  ;;  %v1418_v6 = vld [vmem:[%s1788_s1 + $0x34] sm:$0xf0]  ;;  %v1044_v7 = vor.u32 %v1415_v2, %v1041_v4  ;;  %v1416_v9 = vld [vmem:[%s1788_s1 + $0x2c] sm:$0xf] }
   0x8   :  { %v1048_v8 = vor.u32 %v1418_v6, %v1047_v5  ;;  %v1049_v10 = vld [vmem:[%s1788_s1 + $0x38] sm:$0xf0]  ;;  %v1023_v11 = vld [vmem:[%s1788_s1] sm:$0xf]  ;;  %v1413_v13 = vld [vmem:[%s1788_s1 + $0xc] sm:$0xf0] }
   0x9   :  { %115 = vmatpush.bf16.msra.mxu0 %v1040_v3  ;;  %v1052_v12 = vor.u32 %v1416_v9, %v1049_v10  ;;  %v1411_v14 = vld [vmem:[%s1788_s1 + $0x4] sm:$0xf]  ;;  %v1025_v15 = vld [vmem:[%s1788_s1 + $0x10] sm:$0xf0]  ;;  %128 = vmatpush.bf16.msra.mxu1 %v1044_v7  ;;  %v1024_v16 = vor.u32 %v1413_v13, %v1023_v11  ;;  %v1031_v18 = vld [vmem:[%s1788_s1 + $0x8] sm:$0xf] }
   0xa   :  { %141 = vmatpush.bf16.msra.mxu2 %v1048_v8  ;;  %v1028_v17 = vor.u32 %v1411_v14, %v1025_v15  ;;  %v1414_v19 = vld [vmem:[%s1788_s1 + $0x14] sm:$0xf0]  ;;  %v1412_v20 = vld [vmem:[%s1788_s1 + $0xc] sm:$0xf]  ;;  %v1033_v22 = vld [vmem:[%s1788_s1 + $0x18] sm:$0xf0] }
   0xb   :  { %154 = vmatpush.bf16.msra.mxu3 %v1052_v12  ;;  %v1032_v21 = vor.u32 %v1414_v19, %v1031_v18  ;;  %v46_v23 = vld [vmem:[%s1787_s0] sm:$0xf]  ;;  %v1120_v24 = vld [vmem:[#allocation2 + $0x70] sm:$0xf]  ;;  %v1036_v25 = vor.u32 %v1412_v20, %v1033_v22  ;;  %v1434_v26 = vld [vmem:[#allocation2 + $0x74] sm:$0xf0] }
   0xc   :  { %v1184_v27 = vld [vmem:[#allocation2 + $0xf0] sm:$0xf]  ;;  %v1450_v28 = vld [vmem:[#allocation2 + $0xf4] sm:$0xf0]  ;;  %v1121_v29 = vor.u32 %v1434_v26, %v1120_v24  ;;  %v1112_v31 = vld [vmem:[#allocation2 + $0x60] sm:$0xf] }
   0xd   :  { %116 = vmatpush.bf16.msra.mxu0 %v1024_v16  ;;  %v1185_v30 = vor.u32 %v1450_v28, %v1184_v27  ;;  %v1432_v32 = vld [vmem:[#allocation2 + $0x64] sm:$0xf0]  ;;  %v1176_v33 = vld [vmem:[#allocation2 + $0xe0] sm:$0xf]  ;;  %129 = vmatpush.bf16.msra.mxu1 %v1028_v17  ;;  %v1248_v35 = vld [vmem:[#allocation2 + $0x170] sm:$0xf] }
   0xe   :  { %142 = vmatpush.bf16.msra.mxu2 %v1032_v21  ;;  %v1448_v34 = vld [vmem:[#allocation2 + $0xe4] sm:$0xf0]  ;;  %v1466_v36 = vld [vmem:[#allocation2 + $0x174] sm:$0xf0]  ;;  %v1113_v37 = vor.u32 %v1432_v32, %v1112_v31  ;;  %v1312_v39 = vld [vmem:[#allocation2 + $0x1f0] sm:$0xf] }
   0xf   :  { %155 = vmatpush.bf16.msra.mxu3 %v1036_v25  ;;  %v1249_v38 = vor.u32 %v1466_v36, %v1248_v35  ;;  %v1482_v40 = vld [vmem:[#allocation2 + $0x1f4] sm:$0xf0]  ;;  %v1104_v41 = vld [vmem:[#allocation2 + $0x50] sm:$0xf]  ;;  %v1177_v42 = vor.u32 %v1448_v34, %v1176_v33  ;;  %v1240_v47 = vld [vmem:[#allocation2 + $0x160] sm:$0xf] }
  0x10   :  { %1053 = vmatmul.msk.bf16.vlgmr.msra.gmra.mxu0 %vm105_vm0, %v46_v23  ;;  %v1313_v43 = vor.u32 %v1482_v40, %v1312_v39  ;;  %v1430_v44 = vld [vmem:[#allocation2 + $0x54] sm:$0xf0]  ;;  %v1168_v45 = vld [vmem:[#allocation2 + $0xd0] sm:$0xf]  ;;  %1054 = vmatmul.msk.bf16.vlgmr.msra.gmra.mxu1 %vm105_vm0, %v46_v23  ;;  %v1464_v48 = vld [vmem:[#allocation2 + $0x164] sm:$0xf0] }
  0x11   :  { %632 = vmatpush.bf16.msrb.mxu0 %v1121_v29  ;;  %645 = vmatpush.bf16.msrb.mxu1 %v1185_v30  ;;  %v1446_v46 = vld [vmem:[#allocation2 + $0xd4] sm:$0xf0]  ;;  %v1304_v49 = vld [vmem:[#allocation2 + $0x1e0] sm:$0xf]  ;;  %v1241_v50 = vor.u32 %v1464_v48, %v1240_v47  ;;  %v1480_v51 = vld [vmem:[#allocation2 + $0x1e4] sm:$0xf0]  ;;  %v1105_v52 = vor.u32 %v1430_v44, %v1104_v41 }
  0x12   :  { %1055 = vmatmul.msk.bf16.vlgmr.msra.gmra.mxu2 %vm105_vm0, %v46_v23  ;;  %1056 = vmatmul.msk.bf16.vlgmr.msra.gmra.mxu3 %vm105_vm0, %v46_v23  ;;  %v1305_v53 = vor.u32 %v1480_v51, %v1304_v49  ;;  %v1169_v54 = vor.u32 %v1446_v46, %v1168_v45  ;;  %v1096_v55 = vld [vmem:[#allocation2 + $0x40] sm:$0xf]  ;;  %v1428_v56 = vld [vmem:[#allocation2 + $0x44] sm:$0xf0]  ;;  %v1232_v61 = vld [vmem:[#allocation2 + $0x150] sm:$0xf] }
  0x13   :  { %658 = vmatpush.bf16.msrb.mxu2 %v1249_v38  ;;  %671 = vmatpush.bf16.msrb.mxu3 %v1313_v43  ;;  %v1160_v57 = vld [vmem:[#allocation2 + $0xc0] sm:$0xf]  ;;  %v1097_v58 = vor.u32 %v1428_v56, %v1096_v55  ;;  %v1444_v59 = vld [vmem:[#allocation2 + $0xc4] sm:$0xf0]  ;;  %v1462_v62 = vld [vmem:[#allocation2 + $0x154] sm:$0xf0] }
  0x14   :  { %v1161_v60 = vor.u32 %v1444_v59, %v1160_v57  ;;  %v1296_v63 = vld [vmem:[#allocation2 + $0x1d0] sm:$0xf]  ;;  %v1233_v0 = vor.u32 %v1462_v62, %v1232_v61  ;;  %v1478_v1 = vld [vmem:[#allocation2 + $0x1d4] sm:$0xf0]  ;;  %v1224_v9 = vld [vmem:[#allocation2 + $0x140] sm:$0xf] }
  0x15   :  { %633 = vmatpush.bf16.msrb.mxu0 %v1113_v37  ;;  %646 = vmatpush.bf16.msrb.mxu1 %v1177_v42  ;;  %v1297_v2 = vor.u32 %v1478_v1, %v1296_v63  ;;  %v1088_v3 = vld [vmem:[#allocation2 + $0x30] sm:$0xf]  ;;  %v1426_v4 = vld [vmem:[#allocation2 + $0x34] sm:$0xf0]  ;;  %v1460_v10 = vld [vmem:[#allocation2 + $0x144] sm:$0xf0] }
  0x16   :  { %v1152_v5 = vld [vmem:[#allocation2 + $0xb0] sm:$0xf]  ;;  %v1089_v6 = vor.u32 %v1426_v4, %v1088_v3  ;;  %v1442_v7 = vld [vmem:[#allocation2 + $0xb4] sm:$0xf0]  ;;  %v1288_v11 = vld [vmem:[#allocation2 + $0x1c0] sm:$0xf]  ;;  %v1225_v12 = vor.u32 %v1460_v10, %v1224_v9 }
  0x17   :  { %659 = vmatpush.bf16.msrb.mxu2 %v1241_v50  ;;  %672 = vmatpush.bf16.msrb.mxu3 %v1305_v53  ;;  %v1153_v8 = vor.u32 %v1442_v7, %v1152_v5  ;;  %v1476_v13 = vld [vmem:[#allocation2 + $0x1c4] sm:$0xf0]  ;;  %v1080_v15 = vld [vmem:[#allocation2 + $0x20] sm:$0xf]  ;;  %v1216_v21 = vld [vmem:[#allocation2 + $0x130] sm:$0xf] }
  0x18   :  { %v1289_v14 = vor.u32 %v1476_v13, %v1288_v11  ;;  %v1424_v16 = vld [vmem:[#allocation2 + $0x24] sm:$0xf0]  ;;  %v1144_v17 = vld [vmem:[#allocation2 + $0xa0] sm:$0xf]  ;;  %v1458_v22 = vld [vmem:[#allocation2 + $0x134] sm:$0xf0] }
  0x19   :  { %634 = vmatpush.bf16.msrb.mxu0 %v1105_v52  ;;  %647 = vmatpush.bf16.msrb.mxu1 %v1169_v54  ;;  %v1081_v18 = vor.u32 %v1424_v16, %v1080_v15  ;;  %v1440_v19 = vld [vmem:[#allocation2 + $0xa4] sm:$0xf0]  ;;  %v1280_v23 = vld [vmem:[#allocation2 + $0x1b0] sm:$0xf]  ;;  %v1217_v24 = vor.u32 %v1458_v22, %v1216_v21  ;;  %v1474_v25 = vld [vmem:[#allocation2 + $0x1b4] sm:$0xf0] }
  0x1a   :  { %v1145_v20 = vor.u32 %v1440_v19, %v1144_v17  ;;  %v1281_v26 = vor.u32 %v1474_v25, %v1280_v23  ;;  %v1072_v27 = vld [vmem:[#allocation2 + $0x10] sm:$0xf]  ;;  %v1422_v28 = vld [vmem:[#allocation2 + $0x14] sm:$0xf0]  ;;  %v1208_v33 = vld [vmem:[#allocation2 + $0x120] sm:$0xf] }
  0x1b   :  { %660 = vmatpush.bf16.msrb.mxu2 %v1233_v0  ;;  %673 = vmatpush.bf16.msrb.mxu3 %v1297_v2  ;;  %v1136_v29 = vld [vmem:[#allocation2 + $0x90] sm:$0xf]  ;;  %v1073_v30 = vor.u32 %v1422_v28, %v1072_v27  ;;  %v1438_v31 = vld [vmem:[#allocation2 + $0x94] sm:$0xf0]  ;;  %v1456_v34 = vld [vmem:[#allocation2 + $0x124] sm:$0xf0] }
  0x1c   :  { %v1137_v32 = vor.u32 %v1438_v31, %v1136_v29  ;;  %v1272_v35 = vld [vmem:[#allocation2 + $0x1a0] sm:$0xf]  ;;  %v1209_v37 = vor.u32 %v1456_v34, %v1208_v33  ;;  %v1472_v38 = vld [vmem:[#allocation2 + $0x1a4] sm:$0xf0]  ;;  %v1433_v45 = vld [vmem:[#allocation2 + $0x74] sm:$0xf] }
  0x1d   :  { %635 = vmatpush.bf16.msrb.mxu0 %v1097_v58  ;;  %648 = vmatpush.bf16.msrb.mxu1 %v1161_v60  ;;  %v1665_v36 = vld [vmem:[%s1794_s7] ss:$8 sm:$0xf]  ;;  %v1273_v39 = vor.u32 %v1472_v38, %v1272_v35  ;;  %v1122_v46 = vld [vmem:[#allocation2 + $0x78] sm:$0xf0] }
  0x1e   :  { %v1064_v40 = vld [vmem:[#allocation2] sm:$0xf]  ;;  %v1420_v41 = vld [vmem:[#allocation2 + $0x4] sm:$0xf0]  ;;  %v1125_v48 = vor.u32 %v1433_v45, %v1122_v46  ;;  %v1449_v49 = vld [vmem:[#allocation2 + $0xf4] sm:$0xf] }
  0x1f   :  { %661 = vmatpush.bf16.msrb.mxu2 %v1225_v12  ;;  %674 = vmatpush.bf16.msrb.mxu3 %v1289_v14  ;;  %v1128_v42 = vld [vmem:[#allocation2 + $0x80] sm:$0xf]  ;;  %v1065_v43 = vor.u32 %v1420_v41, %v1064_v40  ;;  %v1436_v44 = vld [vmem:[#allocation2 + $0x84] sm:$0xf0]  ;;  %v1186_v50 = vld [vmem:[#allocation2 + $0xf8] sm:$0xf0] }
  0x20   :  { %v1129_v47 = vor.u32 %v1436_v44, %v1128_v42  ;;  %v1200_v51 = vld [vmem:[#allocation2 + $0x110] sm:$0xf]  ;;  %v1189_v52 = vor.u32 %v1449_v49, %v1186_v50  ;;  %v1454_v53 = vld [vmem:[#allocation2 + $0x114] sm:$0xf0]  ;;  %v57_v56 = vperm.slane %v1665_v36, 0  ;;  %v58_v34 = vperm.slane %v1665_v36, 1 }
  0x21   :  { %636 = vmatpush.bf16.msrb.mxu0 %v1089_v6  ;;  %649 = vmatpush.bf16.msrb.mxu1 %v1153_v8  ;;  %v1264_v54 = vld [vmem:[#allocation2 + $0x190] sm:$0xf]  ;;  %v1470_v55 = vld [vmem:[#allocation2 + $0x194] sm:$0xf0]  ;;  %v1201_v57 = vor.u32 %v1454_v53, %v1200_v51  ;;  %v1431_v59 = vld [vmem:[#allocation2 + $0x64] sm:$0xf] }
  0x22   :  { %v1265_v58 = vor.u32 %v1470_v55, %v1264_v54  ;;  %v1114_v60 = vld [vmem:[#allocation2 + $0x68] sm:$0xf0]  ;;  %v1447_v61 = vld [vmem:[#allocation2 + $0xe4] sm:$0xf]  ;;  %v1192_v0 = vld [vmem:[#allocation2 + $0x100] sm:$0xf] }
  0x23   :  { %662 = vmatpush.bf16.msrb.mxu2 %v1217_v24  ;;  %675 = vmatpush.bf16.msrb.mxu3 %v1281_v26  ;;  %v1117_v62 = vor.u32 %v1431_v59, %v1114_v60  ;;  %v1178_v63 = vld [vmem:[#allocation2 + $0xe8] sm:$0xf0]  ;;  %v1452_v1 = vld [vmem:[#allocation2 + $0x104] sm:$0xf0]  ;;  %v1256_v4 = vld [vmem:[#allocation2 + $0x180] sm:$0xf] }
  0x24   :  { %v1181_v2 = vor.u32 %v1447_v61, %v1178_v63  ;;  %v1193_v3 = vor.u32 %v1452_v1, %v1192_v0  ;;  %v1468_v5 = vld [vmem:[#allocation2 + $0x184] sm:$0xf0]  ;;  %v1465_v6 = vld [vmem:[#allocation2 + $0x174] sm:$0xf]  ;;  %v1250_v8 = vld [vmem:[#allocation2 + $0x178] sm:$0xf0] }
  0x25   :  { %637 = vmatpush.bf16.msrb.mxu0 %v1081_v18  ;;  %650 = vmatpush.bf16.msrb.mxu1 %v1145_v20  ;;  %v1257_v7 = vor.u32 %v1468_v5, %v1256_v4  ;;  %v1481_v9 = vld [vmem:[#allocation2 + $0x1f4] sm:$0xf]  ;;  %v1314_v10 = vld [vmem:[#allocation2 + $0x1f8] sm:$0xf0]  ;;  %v1253_v11 = vor.u32 %v1465_v6, %v1250_v8  ;;  %v1463_v18 = vld [vmem:[#allocation2 + $0x164] sm:$0xf] }
  0x26   :  { %v1317_v12 = vor.u32 %v1481_v9, %v1314_v10  ;;  %v1429_v13 = vld [vmem:[#allocation2 + $0x54] sm:$0xf]  ;;  %v1106_v14 = vld [vmem:[#allocation2 + $0x58] sm:$0xf0]  ;;  %v1242_v19 = vld [vmem:[#allocation2 + $0x168] sm:$0xf0] }
  0x27   :  { %663 = vmatpush.bf16.msrb.mxu2 %v1209_v37  ;;  %676 = vmatpush.bf16.msrb.mxu3 %v1273_v39  ;;  %v1445_v15 = vld [vmem:[#allocation2 + $0xd4] sm:$0xf]  ;;  %v1109_v16 = vor.u32 %v1429_v13, %v1106_v14  ;;  %v1170_v17 = vld [vmem:[#allocation2 + $0xd8] sm:$0xf0]  ;;  %v1245_v21 = vor.u32 %v1463_v18, %v1242_v19  ;;  %v1479_v22 = vld [vmem:[#allocation2 + $0x1e4] sm:$0xf] }
  0x28   :  { %v1173_v20 = vor.u32 %v1445_v15, %v1170_v17  ;;  %v1306_v23 = vld [vmem:[#allocation2 + $0x1e8] sm:$0xf0]  ;;  %v1427_v24 = vld [vmem:[#allocation2 + $0x44] sm:$0xf]  ;;  %v1461_v31 = vld [vmem:[#allocation2 + $0x154] sm:$0xf] }
  0x29   :  { %638 = vmatpush.bf16.msrb.mxu0 %v1073_v30  ;;  %651 = vmatpush.bf16.msrb.mxu1 %v1137_v32  ;;  %v1309_v25 = vor.u32 %v1479_v22, %v1306_v23  ;;  %v1098_v26 = vld [vmem:[#allocation2 + $0x48] sm:$0xf0]  ;;  %v1443_v27 = vld [vmem:[#allocation2 + $0xc4] sm:$0xf]  ;;  %v1234_v32 = vld [vmem:[#allocation2 + $0x158] sm:$0xf0] }
  0x2a   :  { %v1162_v28 = vld [vmem:[#allocation2 + $0xc8] sm:$0xf0]  ;;  %v1101_v29 = vor.u32 %v1427_v24, %v1098_v26  ;;  %v1477_v33 = vld [vmem:[#allocation2 + $0x1d4] sm:$0xf]  ;;  %v1298_v35 = vld [vmem:[#allocation2 + $0x1d8] sm:$0xf0]  ;;  %v1237_v37 = vor.u32 %v1461_v31, %v1234_v32 }
  0x2b   :  { %664 = vmatpush.bf16.msrb.mxu2 %v1201_v57  ;;  %677 = vmatpush.bf16.msrb.mxu3 %v1265_v58  ;;  %v1165_v30 = vor.u32 %v1443_v27, %v1162_v28  ;;  %v1301_v38 = vor.u32 %v1477_v33, %v1298_v35  ;;  %v59_v40 = vperm.slane %v1665_v36, 2  ;;  %v1090_v44 = vld [vmem:[#allocation2 + $0x38] sm:$0xf0]  ;;  %v1441_v45 = vld [vmem:[#allocation2 + $0xb4] sm:$0xf]  ;;  %v60_v60 = vperm.slane %v1665_v36, 3 }
  0x2c   :  { %v1459_v49 = vld [vmem:[#allocation2 + $0x144] sm:$0xf]  ;;  %v1226_v50 = vld [vmem:[#allocation2 + $0x148] sm:$0xf0]  ;;  %v1457_v5 = vld [vmem:[#allocation2 + $0x134] sm:$0xf] }
  0x2d   :  { %639 = vmatpush.bf16.msrb.mxu0 %v1065_v43  ;;  %652 = vmatpush.bf16.msrb.mxu1 %v1129_v47  ;;  %v1425_v43 = vld [vmem:[#allocation2 + $0x34] sm:$0xf]  ;;  %v1229_v53 = vor.u32 %v1459_v49, %v1226_v50  ;;  %v1475_v54 = vld [vmem:[#allocation2 + $0x1c4] sm:$0xf]  ;;  %v1290_v55 = vld [vmem:[#allocation2 + $0x1c8] sm:$0xf0] }
  0x2e   :  { %v1093_v47 = vor.u32 %v1425_v43, %v1090_v44  ;;  %v1423_v58 = vld [vmem:[#allocation2 + $0x24] sm:$0xf]  ;;  %v1082_v59 = vld [vmem:[#allocation2 + $0x28] sm:$0xf0]  ;;  %v1218_v6 = vld [vmem:[#allocation2 + $0x138] sm:$0xf0] }
  0x2f   :  { %665 = vmatpush.bf16.msrb.mxu2 %v1193_v3  ;;  %678 = vmatpush.bf16.msrb.mxu3 %v1257_v7  ;;  %v1085_v61 = vor.u32 %v1423_v58, %v1082_v59  ;;  %v1146_v63 = vld [vmem:[#allocation2 + $0xa8] sm:$0xf0]  ;;  %v1473_v7 = vld [vmem:[#allocation2 + $0x1b4] sm:$0xf]  ;;  %v1221_v36 = vor.u32 %v1457_v5, %v1218_v6  ;;  %v1282_v10 = vld [vmem:[#allocation2 + $0x1b8] sm:$0xf0] }
  0x30   :  { %v1285_v14 = vor.u32 %v1473_v7, %v1282_v10  ;;  %v1138_v17 = vld [vmem:[#allocation2 + $0x98] sm:$0xf0]  ;;  %v1210_v22 = vld [vmem:[#allocation2 + $0x128] sm:$0xf0]  ;;  %v1471_v26 = vld [vmem:[#allocation2 + $0x1a4] sm:$0xf] }
  0x31   :  { %684 = vmatpush.bf16.msra.mxu0 %v1125_v48  ;;  %697 = vmatpush.bf16.msra.mxu1 %v1189_v52  ;;  %v1154_v48 = vld [vmem:[#allocation2 + $0xb8] sm:$0xf0]  ;;  %v1274_v27 = vld [vmem:[#allocation2 + $0x1a8] sm:$0xf0]  ;;  %v1435_v32 = vld [vmem:[#allocation2 + $0x84] sm:$0xf] }
  0x32   :  { %v1157_v52 = vor.u32 %v1441_v45, %v1154_v48  ;;  %v1066_v31 = vld [vmem:[#allocation2 + $0x8] sm:$0xf0]  ;;  %v1266_v43 = vld [vmem:[#allocation2 + $0x198] sm:$0xf0]  ;;  %v1467_v48 = vld [vmem:[#allocation2 + $0x184] sm:$0xf] }
  0x33   :  { %710 = vmatpush.bf16.msra.mxu2 %v1253_v11  ;;  %723 = vmatpush.bf16.msra.mxu3 %v1317_v12  ;;  %v1421_v11 = vld [vmem:[#allocation2 + $0x14] sm:$0xf]  ;;  %v1074_v12 = vld [vmem:[#allocation2 + $0x18] sm:$0xf0] }
  0x34   :  { %v1077_v15 = vor.u32 %v1421_v11, %v1074_v12 }
  0x35   :  { %685 = vmatpush.bf16.msra.mxu0 %v1117_v62  ;;  %698 = vmatpush.bf16.msra.mxu1 %v1181_v2  ;;  %v1439_v62 = vld [vmem:[#allocation2 + $0xa4] sm:$0xf] }
  0x36   :  { %v1149_v0 = vor.u32 %v1439_v62, %v1146_v63 }
  0x37   :  { %711 = vmatpush.bf16.msra.mxu2 %v1245_v21  ;;  %724 = vmatpush.bf16.msra.mxu3 %v1309_v25  ;;  %v1455_v21 = vld [vmem:[#allocation2 + $0x124] sm:$0xf] }
  0x38   :  { %v1213_v25 = vor.u32 %v1455_v21, %v1210_v22 }
  0x39   :  { %686 = vmatpush.bf16.msra.mxu0 %v1109_v16  ;;  %699 = vmatpush.bf16.msra.mxu1 %v1173_v20  ;;  %v1437_v16 = vld [vmem:[#allocation2 + $0x94] sm:$0xf] }
  0x3a   :  { %v1141_v20 = vor.u32 %v1437_v16, %v1138_v17 }
  0x3b   :  { %712 = vmatpush.bf16.msra.mxu2 %v1237_v37  ;;  %725 = vmatpush.bf16.msra.mxu3 %v1301_v38 }
  0x3d   :  { %687 = vmatpush.bf16.msra.mxu0 %v1101_v29  ;;  %700 = vmatpush.bf16.msra.mxu1 %v1165_v30  ;;  %v1277_v29 = vor.u32 %v1471_v26, %v1274_v27  ;;  %v1419_v30 = vld [vmem:[#allocation2 + $0x4] sm:$0xf]  ;;  %v1489_v26 = vld [vmem:[%s1790_s3 + $0x30] sm:$0xff] }
  0x3e   :  { %v1069_v37 = vor.u32 %v1419_v30, %v1066_v31 }
  0x3f   :  { %713 = vmatpush.bf16.msra.mxu2 %v1229_v53 }
  0x41   :  { %688 = vmatpush.bf16.msra.mxu0 %v1093_v47  ;;  %701 = vmatpush.bf16.msra.mxu1 %v1157_v52  ;;  %v1194_v47 = vld [vmem:[#allocation2 + $0x108] sm:$0xf0] }
  0x42   :  { %v1258_v52 = vld [vmem:[#allocation2 + $0x188] sm:$0xf0] }
  0x43   :  { %714 = vmatpush.bf16.msra.mxu2 %v1221_v36 }
  0x45   :  { %689 = vmatpush.bf16.msra.mxu0 %v1085_v61  ;;  %702 = vmatpush.bf16.msra.mxu1 %v1149_v0 }
  0x47   :  { %715 = vmatpush.bf16.msra.mxu2 %v1213_v25 }
  0x49   :  { %690 = vmatpush.bf16.msra.mxu0 %v1077_v15  ;;  %703 = vmatpush.bf16.msra.mxu1 %v1141_v20  ;;  %v1490_v15 = vld [vmem:[%s1790_s3 + $0x38] sm:$0xff] }
  0x4d   :  { %691 = vmatpush.bf16.msra.mxu0 %v1069_v37 }
  0x8d   :  { %v118_v39 = vpop.f32.mrf.mxu0  ;;  %v131_v42 = vpop.f32.mrf.mxu1 }
  0x8e   :  { %v119_v41 = vadd.f32 %v118_v39, %v57_v56  ;;  %v132_v46 = vadd.f32 %v131_v42, %v58_v34  ;;  %v1293_v56 = vor.u32 %v1475_v54, %v1290_v55  ;;  %v1130_v34 = vld [vmem:[#allocation2 + $0x88] sm:$0xf0]  ;;  %v1453_v39 = vld [vmem:[#allocation2 + $0x114] sm:$0xf]  ;;  %v1261_v55 = vor.u32 %v1467_v48, %v1258_v52 }
  0x8f   :  { %v1133_v38 = vor.u32 %v1435_v32, %v1130_v34  ;;  %v1469_v42 = vld [vmem:[#allocation2 + $0x194] sm:$0xf] }
  0x90   :  { %v1057_v51 = vmul.f32 -1.442695, %v119_v41  ;;  %v1058_v57 = vmul.f32 -1.442695, %v132_v46  ;;  %726 = vmatpush.bf16.msra.mxu3 %v1293_v56  ;;  %v1269_v45 = vor.u32 %v1469_v42, %v1266_v43  ;;  %v1451_v46 = vld [vmem:[#allocation2 + $0x104] sm:$0xf] }
  0x91   :  { %704 = vmatpush.bf16.msra.mxu1 %v1133_v38  ;;  %v1487_v38 = vld [vmem:[%s1790_s3 + $0x20] sm:$0xff]  ;;  %v1497_v42 = vld [vmem:[%s1790_s3 + $0x70] sm:$0xff]  ;;  %v1484_v43 = vld [vmem:[%s1790_s3 + $0x8] sm:$0xff] }
  0x92   :  { %1508 = vpow2.f32 %v1057_v51  ;;  %v1197_v51 = vor.u32 %v1451_v46, %v1194_v47  ;;  %v1495_v46 = vld [vmem:[%s1790_s3 + $0x60] sm:$0xff]  ;;  %v1494_v47 = vld [vmem:[%s1790_s3 + $0x58] sm:$0xff]  ;;  %v1493_v48 = vld [vmem:[%s1790_s3 + $0x50] sm:$0xff] }
  0x93   :  { %1510 = vpow2.f32 %v1058_v57 }
  0x94   :  { %727 = vmatpush.bf16.msra.mxu3 %v1285_v14 }
  0x95   :  { %v144_v1 = vpop.f32.mrf.mxu2  ;;  %v157_v3 = vpop.f32.mrf.mxu3 }
  0x96   :  { %v145_v2 = vadd.f32 %v144_v1, %v59_v40  ;;  %v120_v4 = vpop.f32.mrf.mxu0  ;;  %v158_v8 = vadd.f32 %v157_v3, %v60_v60  ;;  %v133_v9 = vpop.f32.mrf.mxu1  ;;  %v1202_v40 = vld [vmem:[#allocation2 + $0x118] sm:$0xf0] }
  0x97   :  { %v1205_v41 = vor.u32 %v1453_v39, %v1202_v40  ;;  %v1498_v39 = vld [vmem:[%s1790_s3 + $0x78] sm:$0xff] }
  0x98   :  { %v1059_v13 = vmul.f32 -1.442695, %v145_v2  ;;  %v1509_v18 = vpop.eup %1508  ;;  %v1060_v19 = vmul.f32 -1.442695, %v158_v8  ;;  %728 = vmatpush.bf16.msra.mxu3 %v1277_v29  ;;  %v1486_v40 = vld [vmem:[%s1790_s3 + $0x18] sm:$0xff] }
  0x99   :  { %v1511_v23 = vpop.eup %1510  ;;  %v1673_v24 = vadd.f32 1.0, %v1509_v18  ;;  %716 = vmatpush.bf16.msra.mxu2 %v1205_v41  ;;  %v1485_v41 = vld [vmem:[%s1790_s3 + $0x10] sm:$0xff] }
  0x9a   :  { %1512 = vpow2.f32 %v1059_v13  ;;  %v1675_v28 = vadd.f32 1.0, %v1511_v23 }
  0x9b   :  { %1514 = vpow2.f32 %v1060_v19  ;;  %vm182_vm1 = vweird.f32 %v1673_v24  ;;  %v186_v60 = vand.u32 2147483647, %v1673_v24  ;;  %v188_v61 = vand.u32 2147483648, %v1673_v24 }
  0x9c   :  { %1516 = vrcp.f32 %v1673_v24  ;;  %729 = vmatpush.bf16.msra.mxu3 %v1269_v45  ;;  %v201_v0 = vand.u32 2147483647, %v1675_v28  ;;  %v203_v1 = vand.u32 2147483648, %v1675_v28  ;;  %vm197_vm3 = vweird.f32 %v1675_v28  ;;  %v1483_v45 = vld [vmem:[%s1790_s3] sm:$0xff] }
  0x9d   :  { %1518 = vrcp.f32 %v1675_v28  ;;  %v146_v33 = vpop.f32.mrf.mxu2  ;;  %v159_v35 = vpop.f32.mrf.mxu3  ;;  %717 = vmatpush.bf16.msra.mxu2 %v1197_v51  ;;  %vm187_vm6 = vcmp.eq.f32.partialorder %v186_v60, 8.507059e+37  ;;  %v189_v6 = vor.u32 1.1754944e-38, %v188_v61  ;;  %v1061_v51 = vld [vmem:[%s1794_s7 + $0x1] ss:$8 sm:$0x3] }
  0x9e   :  { %vm202_vm8 = vcmp.eq.f32.partialorder %v201_v0, 8.507059e+37  ;;  %v204_v36 = vor.u32 1.1754944e-38, %v203_v1  ;;  %v1488_v35 = vld [vmem:[%s1790_s3 + $0x28] sm:$0xff] }
  0xa0   :  { %v1513_v44 = vpop.eup %1512  ;;  %730 = vmatpush.bf16.msra.mxu3 %v1261_v55 }
  0xa1   :  { %v1515_v49 = vpop.eup %1514  ;;  %v1679_v50 = vadd.f32 1.0, %v1513_v44  ;;  %v1496_v44 = vld [vmem:[%s1790_s3 + $0x68] sm:$0xff] }
  0xa2   :  { %v1517_v53 = vpop.eup %1516  ;;  %v1681_v54 = vadd.f32 1.0, %v1515_v49  ;;  %v1492_v49 = vld [vmem:[%s1790_s3 + $0x48] sm:$0xff] }
  0xa3   :  { %v1519_v57 = vpop.eup %1518  ;;  %1520 = vrcp.f32 %v1679_v50  ;;  %v178_v56 = vmul.f32 %v1517_v53, %v1673_v24  ;;  %vm183_vm2 = vweird.f32 %v1517_v53  ;;  %v216_v14 = vand.u32 2147483647, %v1679_v50 }
  0xa4   :  { %1522 = vrcp.f32 %v1681_v54  ;;  %v193_v58 = vmul.f32 %v1519_v57, %v1675_v28  ;;  %vm198_vm4 = vweird.f32 %v1519_v57  ;;  %vm184_vm5 = vmor %vm182_vm1, %vm183_vm2  ;;  %v218_v18 = vand.u32 2147483648, %v1679_v50 }
  0xa5   :  { %v179_v59 = vsub.f32 1.0, %v178_v56  ;;  %vm199_vm7 = vmor %vm197_vm3, %vm198_vm4  ;;  %v233_v22 = vand.u32 2147483648, %v1681_v54  ;;  %v231_v24 = vand.u32 2147483647, %v1681_v54  ;;  %vm212_vm11 = vweird.f32 %v1679_v50 }
  0xa6   :  { %v194_v62 = vsub.f32 1.0, %v193_v58  ;;  %v219_v27 = vor.u32 1.1754944e-38, %v218_v18  ;;  %vm227_vm13 = vweird.f32 %v1681_v54  ;;  %vm217_vm14 = vcmp.eq.f32.partialorder %v216_v14, 8.507059e+37  ;;  %v1501_v18 = vld [vmem:[%s1791_s4 + $0x10] sm:$0xff] }
  0xa7   :  { %v180_v63 = vmul.f32 %v1517_v53, %v179_v59  ;;  %v234_v30 = vor.u32 1.1754944e-38, %v233_v22  ;;  %vm232_vm0 = vcmp.eq.f32.partialorder %v231_v24, 8.507059e+37  ;;  %vm935_vm2 = vcmask 523264  }
  0xa8   :  { %v195_v2 = vmul.f32 %v1519_v57, %v194_v62  ;;  %vm970_vm4 = vcmask 130048  }
  0xa9   :  { %v1521_v3 = vpop.eup %1520  ;;  %v181_v4 = vadd.f32 %v1517_v53, %v180_v63 }
  0xaa   :  { %v1523_v5 = vpop.eup %1522  ;;  %v196_v7 = vadd.f32 %v1519_v57, %v195_v2  ;;  %v208_v8 = vmul.f32 %v1521_v3, %v1679_v50  ;;  %vm213_vm9 = vweird.f32 %v1521_v3 }
  0xab   :  { %v185_v9 = vsel %vm184_vm5, %v1517_v53, %v181_v4  ;;  %v223_v10 = vmul.f32 %v1523_v5, %v1681_v54  ;;  %vm228_vm10 = vweird.f32 %v1523_v5  ;;  %vm214_vm12 = vmor %vm212_vm11, %vm213_vm9  ;;  %v1491_v53 = vld [vmem:[%s1790_s3 + $0x40] sm:$0xff]  ;;  %v308_v54 = vperm.slane %v1061_v51, 0 }
  0xac   :  { %v190_v11 = vsel %vm187_vm6, %v189_v6, %v185_v9  ;;  %v200_v12 = vsel %vm199_vm7, %v1519_v57, %v196_v7  ;;  %v209_v13 = vsub.f32 1.0, %v208_v8  ;;  %vm229_vm15 = vmor %vm227_vm13, %vm228_vm10  ;;  %vm1014_vm5 = vcmask 31744  }
  0xad   :  { %v239_v16 = vpack.c.bf16 %v190_v11, %v190_v11  ;;  %v205_v17 = vsel %vm202_vm8, %v204_v36, %v200_v12  ;;  %v224_v19 = vsub.f32 1.0, %v223_v10 }
  0xae   :  { %v240_v20 = vpack.c.bf16 %v205_v17, %v205_v17  ;;  %v210_v21 = vmul.f32 %v1521_v3, %v209_v13  ;;  %v1502_v17 = vld [vmem:[%s1791_s4 + $0x18] sm:$0xff] }
  0xaf   :  { %640 = vmatmul.bf16.vlgmr.msrb.gmra.mxu0 %v239_v16  ;;  %v225_v23 = vmul.f32 %v1523_v5, %v224_v19  ;;  %v1500_v19 = vld [vmem:[%s1791_s4 + $0x8] sm:$0xff] }
  0xb0   :  { %653 = vmatmul.bf16.vlgmr.msrb.gmra.mxu1 %v240_v20  ;;  %v211_v25 = vadd.f32 %v1521_v3, %v210_v21  ;;  %869 = vmatpush.bf16.msrb.mxu0 %v1490_v15  ;;  %v1499_v21 = vld [vmem:[%s1791_s4] sm:$0xff] }
  0xb1   :  { %v226_v28 = vadd.f32 %v1523_v5, %v225_v23  ;;  %882 = vmatpush.bf16.msrb.mxu1 %v1498_v39  ;;  %v738_v23 = vld [vmem:[%s1794_s7 + $0x2] ss:$0 sm:$0xff] }
  0xb2   :  { %v215_v29 = vsel %vm214_vm12, %v1521_v3, %v211_v25  ;;  %v309_v3 = vperm.slane %v1061_v51, 1 }
  0xb3   :  { %v220_v31 = vsel %vm217_vm14, %v219_v27, %v215_v29  ;;  %v230_v32 = vsel %vm229_vm15, %v1523_v5, %v226_v28 }
  0xb4   :  { %v241_v33 = vpack.c.bf16 %v220_v31, %v220_v31  ;;  %v235_v34 = vsel %vm232_vm0, %v234_v30, %v230_v32  ;;  %870 = vmatpush.bf16.msrb.mxu0 %v1489_v26 }
  0xb5   :  { %v242_v37 = vpack.c.bf16 %v235_v34, %v235_v34  ;;  %883 = vmatpush.bf16.msrb.mxu1 %v1497_v42  ;;  %v1503_v34 = vld [vmem:[%s1792_s5] sm:$0xff] }
  0xb6   :  { %666 = vmatmul.bf16.vlgmr.msrb.gmra.mxu2 %v241_v33 }
  0xb7   :  { %679 = vmatmul.bf16.vlgmr.msrb.gmra.mxu3 %v242_v37  ;;  %943 = vmatpush.bf16.msrb.mxu2 %v1502_v17 }
  0xb8   :  { %871 = vmatpush.bf16.msrb.mxu0 %v1488_v35  ;;  %981 = vmatpush.bf16.msrb.mxu3 %v1503_v34  ;;  %v1504_v35 = vld [vmem:[%s1793_s6] sm:$0xff] }
  0xb9   :  { %884 = vmatpush.bf16.msrb.mxu1 %v1496_v44 }
  0xbb   :  { %944 = vmatpush.bf16.msrb.mxu2 %v1501_v18 }
  0xbc   :  { %872 = vmatpush.bf16.msrb.mxu0 %v1487_v38 }
  0xbd   :  { %885 = vmatpush.bf16.msrb.mxu1 %v1495_v46 }
  0xbf   :  { %692 = vmatmul.bf16.vlgmr.msra.gmra.mxu0 %v239_v16  ;;  %945 = vmatpush.bf16.msrb.mxu2 %v1500_v19 }
  0xc0   :  { %705 = vmatmul.bf16.vlgmr.msra.gmra.mxu1 %v240_v20  ;;  %873 = vmatpush.bf16.msrb.mxu0 %v1486_v40 }
  0xc1   :  { %886 = vmatpush.bf16.msrb.mxu1 %v1494_v47 }
  0xc3   :  { %946 = vmatpush.bf16.msrb.mxu2 %v1499_v21 }
  0xc4   :  { %874 = vmatpush.bf16.msrb.mxu0 %v1485_v41 }
  0xc5   :  { %887 = vmatpush.bf16.msrb.mxu1 %v1493_v48 }
  0xc6   :  { %718 = vmatmul.bf16.vlgmr.msra.gmra.mxu2 %v241_v33 }
  0xc7   :  { %731 = vmatmul.bf16.vlgmr.msra.gmra.mxu3 %v242_v37  ;;  %1008 = vmatpush.bf16.msra.mxu2 %v1504_v35  ;;  %v901_v37 = vld [vmem:[%s1794_s7 + $0x3] ss:$0 sm:$0xff] }
  0xc8   :  { %875 = vmatpush.bf16.msrb.mxu0 %v1484_v43 }
  0xc9   :  { %888 = vmatpush.bf16.msrb.mxu1 %v1492_v49  ;;  %v960_v49 = vld [vmem:[%s1794_s7 + $0x4] ss:$0 sm:$0xff] }
  0xcc   :  { %876 = vmatpush.bf16.msrb.mxu0 %v1483_v45 }
  0xcd   :  { %889 = vmatpush.bf16.msrb.mxu1 %v1491_v53 }
 0x12c   :  { %v641_v50 = vpop.f32.mrf.mxu0 }
 0x12d   :  { %v654_v52 = vpop.f32.mrf.mxu1  ;;  %v642_v55 = vadd.f32 %v641_v50, %v308_v54 }
 0x12f   :  { %v655_v58 = vadd.f32 %v654_v52, %v642_v55  ;;  %v988_v55 = vld [vmem:[%s1794_s7 + $0x5] ss:$0 sm:$0xff] }
 0x134   :  { %v643_v57 = vpop.f32.mrf.mxu0 }
 0x135   :  { %v656_v56 = vpop.f32.mrf.mxu1 }
 0x139   :  { %v667_v59 = vpop.f32.mrf.mxu2 }
 0x13a   :  { %v668_v60 = vadd.f32 %v667_v59, %v655_v58  ;;  %v680_v61 = vpop.f32.mrf.mxu3 }
 0x13c   :  { %v681_v62 = vadd.f32 %v680_v61, %v668_v60  ;;  %v693_v63 = vpop.f32.mrf.mxu0 }
 0x13d   :  { %v706_v0 = vpop.f32.mrf.mxu1  ;;  %v694_v6 = vadd.f32 %v693_v63, %v309_v3 }
 0x13e   :  { %v736_v1 = vmax.f32 %v681_v62, 0.0 }
 0x13f   :  { %v707_v9 = vadd.f32 %v706_v0, %v694_v6 }
 0x140   :  { %v739_v2 = vpack.c.bf16 %v736_v1, %v736_v1 }
 0x141   :  { %v669_v4 = vpop.f32.mrf.mxu2 }
 0x142   :  { %v682_v5 = vpop.f32.mrf.mxu3  ;;  %877 = vmatmul.bf16.vlgmr.msrb.gmra.mxu0 %v739_v2 }
 0x144   :  { %v695_v7 = vpop.f32.mrf.mxu0 }
 0x145   :  { %v708_v8 = vpop.f32.mrf.mxu1 }
 0x149   :  { %v719_v36 = vpop.f32.mrf.mxu2 }
 0x14a   :  { %v720_v10 = vadd.f32 %v719_v36, %v707_v9  ;;  %v732_v11 = vpop.f32.mrf.mxu3 }
 0x14c   :  { %v733_v12 = vadd.f32 %v732_v11, %v720_v10 }
 0x14e   :  { %v737_v13 = vmax.f32 %v733_v12, 0.0 }
 0x150   :  { %v740_v14 = vpack.c.bf16 %v737_v13, %v737_v13 }
 0x151   :  { %v721_v15 = vpop.f32.mrf.mxu2 }
 0x152   :  { %v734_v16 = vpop.f32.mrf.mxu3  ;;  %890 = vmatmul.bf16.vlgmr.msrb.gmra.mxu1 %v740_v14 }
 0x1bf   :  { %v878_v20 = vpop.f32.mrf.mxu0 }
 0x1c0   :  { %v879_v24 = vadd.f32 %v878_v20, %v738_v23 }
 0x1c7   :  { %v880_v22 = vpop.f32.mrf.mxu0 }
 0x1cf   :  { %v891_v25 = vpop.f32.mrf.mxu1 }
 0x1d0   :  { %v892_v26 = vadd.f32 %v891_v25, %v879_v24 }
 0x1d2   :  { %v896_v27 = vmin.f32 %v892_v26, 0.0  ;;  %vm895_vm1 = vcmp.gt.f32.partialorder %v892_v26, 0.0 }
 0x1d4   :  { %v897_v28 = vmul.f32 1.442695, %v896_v27 }
 0x1d6   :  { %1524 = vpow2.f32 %v897_v28 }
 0x1d7   :  { %v893_v29 = vpop.f32.mrf.mxu1 }
 0x1dc   :  { %v1525_v30 = vpop.eup %1524 }
 0x1dd   :  { %v1382_v31 = vadd.f32 -1.0, %v1525_v30 }
 0x1df   :  { %v900_v32 = vsel %vm895_vm1, %v892_v26, %v1382_v31 }
 0x1e0   :  { %v902_v33 = vpack.c.bf16 %v900_v32, %v900_v32 }
 0x1e2   :  { %1399 = vmatmul.msk.bf16.vlgmr.msrb.gmra.mxu2 %vm935_vm2, %v902_v33 }
 0x265   :  { %v948_v38 = vpop.f32.mrf.mxu2 }
 0x266   :  { %v949_v39 = vadd.f32 %v948_v38, %v901_v37 }
 0x268   :  { %v953_v40 = vmin.f32 %v949_v39, 0.0  ;;  %vm952_vm3 = vcmp.gt.f32.partialorder %v949_v39, 0.0 }
 0x26a   :  { %v954_v41 = vmul.f32 1.442695, %v953_v40 }
 0x26c   :  { %1526 = vpow2.f32 %v954_v41 }
 0x26d   :  { %v950_v42 = vpop.f32.mrf.mxu2 }
 0x272   :  { %v1527_v43 = vpop.eup %1526 }
 0x273   :  { %v1400_v44 = vadd.f32 -1.0, %v1527_v43 }
 0x275   :  { %v957_v45 = vmul.f32 1.6732632, %v1400_v44 }
 0x277   :  { %v958_v46 = vsel %vm952_vm3, %v949_v39, %v957_v45 }
 0x278   :  { %v959_v47 = vmul.f32 1.050701, %v958_v46 }
 0x27a   :  { %v961_v48 = vpack.c.bf16 %v959_v47, %v959_v47 }
 0x27c   :  { %1405 = vmatmul.msk.bf16.vlgmr.msrb.gmra.mxu3 %vm970_vm4, %v961_v48 }
 0x2ff   :  { %v983_v50 = vpop.f32.mrf.mxu3 }
 0x300   :  { %v984_v51 = vadd.f32 %v983_v50, %v960_v49 }
 0x302   :  { %1528 = vtanh.f32 %v984_v51 }
 0x307   :  { %v985_v52 = vpop.f32.mrf.mxu3 }
 0x308   :  { %v1529_v53 = vpop.eup %1528 }
 0x309   :  { %v989_v54 = vpack.c.bf16 %v1529_v53, %v1529_v53 }
 0x30b   :  { %1410 = vmatmul.msk.bf16.vlgmr.msra.gmra.mxu2 %vm970_vm4, %v989_v54 }
 0x38e   :  { %v1010_v57 = vpop.f32.mrf.mxu2 }
 0x38f   :  { %v1011_v56 = vadd.f32 %v1010_v57, %v988_v55 }
 0x391   :  { %1015 = vst.msk [vmem:[%s1795_s8] sm:$0xff] %vm1014_vm5, %v1011_v56 }
 0x396   :  { %v1012_v58 = vpop.f32.mrf.mxu2 }
 0x397   :  { %1020 = vsyncpa [#allocation3], 1 }

</bundles_post_ra>
